<compile_context>
chip_gen: v5e
topology: v5e:2x2
jax: 0.10.0
libtpu: 0.0.40
codegen_flags: <defaults>
</compile_context>

<pallas_src>
import functools

import jax
import jax.numpy as jnp
from jax.experimental import pallas as pl
from jax.experimental.pallas import tpu as pltpu

_LANE = 128  # lane-dense output slab width
_SUB = 8     # sublane multiple for the node axis


def _masked_attention(s_dst, s_src, adj, xp):
    """Masked GAT attention aggregation; returns alpha @ xp.

    s_dst: (N, 1) dst scores, s_src: (1, N) src scores, adj: (N, N) bool,
    xp: (N, F) projected features.
    e[i, j] = LeakyReLU(s_dst[i] + s_src[j])   (i = dst, j = src).
    """
    e = s_dst + s_src                                                # (N, N)
    e = jnp.where(e > 0, e, 0.2 * e)                                 # LeakyReLU(0.2)
    # Masked softmax kept in f32 (the -1e30 sentinel would overflow in bf16).
    logits = jnp.where(adj, e, -1e30)
    m = jnp.max(logits, axis=-1, keepdims=True)
    p = jnp.exp(logits - m)
    # Every real dst row has a self-loop, so the row max is finite and the
    # denominator >= exp(0).  EUP approx reciprocal instead of a divide.
    alpha = p * pl.reciprocal(jnp.sum(p, axis=-1, keepdims=True), approx=True)
    return jnp.dot(alpha, xp, preferred_element_type=jnp.float32)


def _gat_model_kernel(num_heads, f1,
                      x_ref, mask_ref,
                      w1_ref, asrc1_ref, adst1_ref, b1_ref,
                      w2_ref, asrc2_ref, adst2_ref, b2_ref,
                      out_ref):
    """Fused 2-layer GAT forward; whole graph resident in VMEM (single step)."""
    adj = mask_ref[...] != 0                                         # (N, N) bool

    # ---- layer 1: head-batched projection + head-batched attention scores --
    x = x_ref[...]                                                   # (N, Fin)
    xp1 = jnp.dot(x, w1_ref[...], preferred_element_type=jnp.float32)  # (N, H*F1)

    # Block-diagonal attention matrices -> all heads' scores in two matmuls.
    # s_src_all[h, j] = <a_src1[h], xp1[j, h*F1:(h+1)*F1]>   (row-form: no transpose)
    s_src_all = jax.lax.dot_general(asrc1_ref[...], xp1,
                                    (((1,), (1,)), ((), ())),
                                    preferred_element_type=jnp.float32)   # (H, N)
    s_dst_all = jnp.dot(xp1, adst1_ref[...],
                        preferred_element_type=jnp.float32)               # (N, H)

    b1 = b1_ref[...]                                                 # (H, F1)
    w2 = w2_ref[...]                                                 # (H*F1, F2pad)

    # Layer-2 projection accumulated head by head:
    #   relu(concat_h(out_h) + b1) @ W2 == sum_h relu(out_h + b1_h) @ W2[h*F1:(h+1)*F1]
    # which avoids materializing the lane-concatenated hidden activation.
    n = x.shape[0]
    xp2 = jnp.zeros((n, w2.shape[1]), jnp.float32)
    for h in range(num_heads):                                       # static unroll
        out_h = _masked_attention(s_dst_all[:, h:h + 1],
                                  s_src_all[h:h + 1, :],
                                  adj,
                                  xp1[:, h * f1:(h + 1) * f1])       # (N, F1)
        h1_h = jnp.maximum(out_h + b1[h:h + 1, :], 0.0)              # bias + F.relu
        xp2 = xp2 + jnp.dot(h1_h, w2[h * f1:(h + 1) * f1, :],
                            preferred_element_type=jnp.float32)

    # ---- layer 2: single head on the 128-lane padded projection -------------
    s_src2 = jax.lax.dot_general(asrc2_ref[...], xp2,
                                 (((1,), (1,)), ((), ())),
                                 preferred_element_type=jnp.float32)      # (1, N)
    s_dst2 = jnp.dot(xp2, adst2_ref[...],
                     preferred_element_type=jnp.float32)                  # (N, 1)
    out2 = _masked_attention(s_dst2, s_src2, adj, xp2) + b2_ref[...]
    out_ref[...] = out2                                              # full-width store


def gat_model_forward(params, x, mask):
    """Fused GATModel.forward: y = gat2(relu(gat1(x))).  Returns [N, F2]."""
    N, _ = x.shape
    H, F1 = params["a_src1"].shape
    F2 = params["W2"].shape[1]

    f2p = pl.cdiv(F2, _LANE) * _LANE            # lane-dense padded output width
    pad2 = f2p - F2
    npad = pl.cdiv(N, _SUB) * _SUB              # sublane-aligned node count
    padn = npad - N

    # Block-diagonal layer-1 attention matrices (built once on host).
    eye = jnp.eye(H, dtype=jnp.float32)
    asrc1_blk = (params["a_src1"][:, None, :] * eye[:, :, None]).reshape(H, H * F1)
    adst1_blk = (params["a_dst1"][:, None, :] * eye[:, :, None]).reshape(H, H * F1).T

    # Zero-pad layer-2 params to a 128-lane slab (padded lanes stay exactly 0).
    w2p = jnp.pad(params["W2"], ((0, 0), (0, pad2)))
    asrc2p = jnp.pad(params["a_src2"], ((0, 0), (0, pad2)))           # (1, f2p)
    adst2p = jnp.pad(params["a_dst2"], ((0, 0), (0, pad2))).T         # (f2p, 1)
    b2p = jnp.pad(params["b2"], ((0, 0), (0, pad2)))

    # Pad the node axis; padded dst rows are garbage (sliced off), padded src
    # columns are mask=0 so they never contribute to real rows.
    x_p = jnp.pad(x, ((0, padn), (0, 0)))
    mask_i8 = jnp.pad((mask != 0).astype(jnp.int8), ((0, padn), (0, padn)))

    out = pl.pallas_call(
        functools.partial(_gat_model_kernel, H, F1),
        out_shape=jax.ShapeDtypeStruct((npad, f2p), jnp.float32),
    )(x_p, mask_i8, params["W1"], asrc1_blk, adst1_blk, params["b1"],
      w2p, asrc2p, adst2p, b2p)
    return out[:N, :F2]


# ---------------- pure-JAX reference (for a sanity check) -------------------
def _gat_model_ref(params, x, mask_f32):
    H, F1 = params["a_src1"].shape
    heads = []
    for h in range(H):
        W_h = params["W1"][:, h * F1:(h + 1) * F1]
        xp = x @ W_h
        s_dst = jnp.sum(xp * params["a_dst1"][h], axis=-1, keepdims=True)
        s_src = jnp.sum(xp * params["a_src1"][h], axis=-1)[None, :]
        e = s_dst + s_src
        e = jnp.where(e > 0, e, 0.2 * e)
        logits = jnp.where(mask_f32 > 0, e, -1e30)
        alpha = jax.nn.softmax(logits, axis=-1)
        heads.append(alpha @ xp + params["b1"][h])
    h1 = jnp.maximum(jnp.concatenate(heads, axis=-1), 0.0)

    xp2 = h1 @ params["W2"]
    s_dst = jnp.sum(xp2 * params["a_dst2"], axis=-1, keepdims=True)
    s_src = jnp.sum(xp2 * params["a_src2"], axis=-1)[None, :]
    e = s_dst + s_src
    e = jnp.where(e > 0, e, 0.2 * e)
    logits = jnp.where(mask_f32 > 0, e, -1e30)
    alpha = jax.nn.softmax(logits, axis=-1)
    return alpha @ xp2 + params["b2"]


# ---------------------------------- main ------------------------------------
if __name__ == "__main__":
    # Small shapes consistent with the module.
    N = 16                 # number of graph nodes
    in_channels = 8
    hidden_channels = 16
    out_channels = 8
    num_heads = 2

    key = jax.random.PRNGKey(0)
    keys = jax.random.split(key, 10)

    # Deterministic synthetic parameters (head-concatenated GATConv layouts).
    params = {
        # gat1: in_channels -> hidden_channels, heads = num_heads (concat)
        "W1": jax.random.normal(
            keys[0], (in_channels, num_heads * hidden_channels), jnp.float32) * 0.2,
        "a_src1": jax.random.normal(
            keys[1], (num_heads, hidden_channels), jnp.float32) * 0.2,
        "a_dst1": jax.random.normal(
            keys[2], (num_heads, hidden_channels), jnp.float32) * 0.2,
        "b1": jax.random.normal(
            keys[3], (num_heads, hidden_channels), jnp.float32) * 0.1,
        # gat2: hidden_channels * num_heads -> out_channels, heads = 1
        "W2": jax.random.normal(
            keys[4], (num_heads * hidden_channels, out_channels), jnp.float32) * 0.2,
        "a_src2": jax.random.normal(keys[5], (1, out_channels), jnp.float32) * 0.2,
        "a_dst2": jax.random.normal(keys[6], (1, out_channels), jnp.float32) * 0.2,
        "b2": jax.random.normal(keys[7], (1, out_channels), jnp.float32) * 0.1,
    }

    # Inputs: node features, a bidirectional ring graph, and (unused) edge_attr.
    x = jax.random.normal(keys[8], (N, in_channels), jnp.float32)
    src = jnp.concatenate([jnp.arange(N), (jnp.arange(N) + 1) % N]).astype(jnp.int32)
    dst = jnp.concatenate([(jnp.arange(N) + 1) % N, jnp.arange(N)]).astype(jnp.int32)
    edge_index = jnp.stack([src, dst])                        # [2, E], E = 32
    edge_attr = jax.random.normal(keys[9], (edge_index.shape[1], 4), jnp.float32)

    # Dense int8 adjacency mask: mask[dst, src] = 1, plus self-loops.
    mask = jnp.zeros((N, N), jnp.int8)
    mask = mask.at[edge_index[1], edge_index[0]].set(1)
    mask = mask.at[jnp.arange(N), jnp.arange(N)].set(1)

    y = gat_model_forward(params, x, mask)
    y = jax.block_until_ready(y)

    y_ref = _gat_model_ref(params, x, mask.astype(jnp.float32))
    assert y.shape == (N, out_channels)
    assert jnp.allclose(y, y_ref, rtol=2e-2, atol=2e-2), "mismatch vs reference"

    print("KERNEL_OK")
</pallas_src>

<mosaic_0001>
module attributes {stable_mosaic.version = 11 : i64} {
  func.func @_gat_model_kernel(%arg0: memref<16x8xf32, #tpu.memory_space<vmem>>, %arg1: memref<16x16xi8, #tpu.memory_space<vmem>>, %arg2: memref<8x32xf32, #tpu.memory_space<vmem>>, %arg3: memref<2x32xf32, #tpu.memory_space<vmem>>, %arg4: memref<32x2xf32, #tpu.memory_space<vmem>>, %arg5: memref<2x16xf32, #tpu.memory_space<vmem>>, %arg6: memref<32x128xf32, #tpu.memory_space<vmem>>, %arg7: memref<1x128xf32, #tpu.memory_space<vmem>>, %arg8: memref<128x1xf32, #tpu.memory_space<vmem>>, %arg9: memref<1x128xf32, #tpu.memory_space<vmem>>, %arg10: memref<16x128xf32, #tpu.memory_space<vmem>>) attributes {dimension_semantics = [], scalar_prefetch = 0 : i64, scratch_operands = 0 : i64, tpu.core_type = #tpu.core_type<tc>} {
    %c0 = arith.constant 0 : index
    %c0_0 = arith.constant 0 : index
    %0 = vector.load %arg1[%c0, %c0_0] : memref<16x16xi8, #tpu.memory_space<vmem>>, vector<16x16xi8>
    %c0_i8 = arith.constant 0 : i8
    %1 = vector.broadcast %c0_i8 : i8 to vector<16x16xi8>
    %2 = arith.cmpi ne, %0, %1 : vector<16x16xi8>
    %c0_1 = arith.constant 0 : index
    %c0_2 = arith.constant 0 : index
    %3 = vector.load %arg0[%c0_1, %c0_2] : memref<16x8xf32, #tpu.memory_space<vmem>>, vector<16x8xf32>
    %c0_3 = arith.constant 0 : index
    %c0_4 = arith.constant 0 : index
    %4 = vector.load %arg2[%c0_3, %c0_4] : memref<8x32xf32, #tpu.memory_space<vmem>>, vector<8x32xf32>
    %cst = arith.constant dense<0.000000e+00> : vector<16x32xf32>
    %5 = tpu.matmul %3, %4, %cst {dimension_numbers = #tpu.dot_dimension_numbers<[1], [0], [0], [1], [0, 0, 1, 1], [], []>} : vector<16x8xf32>, vector<8x32xf32>, vector<16x32xf32> -> vector<16x32xf32>
    %c0_5 = arith.constant 0 : index
    %c0_6 = arith.constant 0 : index
    %6 = vector.load %arg3[%c0_5, %c0_6] : memref<2x32xf32, #tpu.memory_space<vmem>>, vector<2x32xf32>
    %cst_7 = arith.constant dense<0.000000e+00> : vector<2x16xf32>
    %7 = tpu.matmul %6, %5, %cst_7 {dimension_numbers = #tpu.dot_dimension_numbers<[1], [1], [0], [0], [0, 0, 1, 0], [], []>} : vector<2x32xf32>, vector<16x32xf32>, vector<2x16xf32> -> vector<2x16xf32>
    %c0_8 = arith.constant 0 : index
    %c0_9 = arith.constant 0 : index
    %8 = vector.load %arg4[%c0_8, %c0_9] : memref<32x2xf32, #tpu.memory_space<vmem>>, vector<32x2xf32>
    %cst_10 = arith.constant dense<0.000000e+00> : vector<16x2xf32>
    %9 = tpu.matmul %5, %8, %cst_10 {dimension_numbers = #tpu.dot_dimension_numbers<[1], [0], [0], [1], [0, 0, 1, 1], [], []>} : vector<16x32xf32>, vector<32x2xf32>, vector<16x2xf32> -> vector<16x2xf32>
    %c0_11 = arith.constant 0 : index
    %c0_12 = arith.constant 0 : index
    %10 = vector.load %arg5[%c0_11, %c0_12] : memref<2x16xf32, #tpu.memory_space<vmem>>, vector<2x16xf32>
    %c0_13 = arith.constant 0 : index
    %c0_14 = arith.constant 0 : index
    %11 = vector.load %arg6[%c0_13, %c0_14] : memref<32x128xf32, #tpu.memory_space<vmem>>, vector<32x128xf32>
    %cst_15 = arith.constant 0.000000e+00 : f32
    %12 = vector.broadcast %cst_15 : f32 to vector<16x128xf32>
    %13 = vector.extract_strided_slice %9 {offsets = [0, 0], sizes = [16, 1], strides = [1, 1]} : vector<16x2xf32> to vector<16x1xf32>
    %14 = vector.extract_strided_slice %7 {offsets = [0, 0], sizes = [1, 16], strides = [1, 1]} : vector<2x16xf32> to vector<1x16xf32>
    %15 = vector.extract_strided_slice %5 {offsets = [0, 0], sizes = [16, 16], strides = [1, 1]} : vector<16x32xf32> to vector<16x16xf32>
    %16 = vector.broadcast %13 : vector<16x1xf32> to vector<16x16xf32>
    %17 = vector.broadcast %14 : vector<1x16xf32> to vector<16x16xf32>
    %18 = arith.addf %16, %17 : vector<16x16xf32>
    %cst_16 = arith.constant 0.000000e+00 : f32
    %19 = vector.broadcast %cst_16 : f32 to vector<16x16xf32>
    %20 = arith.cmpf ogt, %18, %19 : vector<16x16xf32>
    %cst_17 = arith.constant 2.000000e-01 : f32
    %21 = vector.broadcast %cst_17 : f32 to vector<16x16xf32>
    %22 = arith.mulf %21, %18 : vector<16x16xf32>
    %23 = arith.select %20, %18, %22 : vector<16x16xi1>, vector<16x16xf32>
    %cst_18 = arith.constant -1.000000e+30 : f32
    %24 = vector.broadcast %cst_18 : f32 to vector<16x16xf32>
    %25 = arith.select %2, %23, %24 : vector<16x16xi1>, vector<16x16xf32>
    %cst_19 = arith.constant dense<0xFF800000> : vector<16xf32>
    %26 = vector.multi_reduction <maximumf>, %25, %cst_19 [1] : vector<16x16xf32> to vector<16xf32>
    %27 = vector.shape_cast %26 : vector<16xf32> to vector<16x1xf32>
    %28 = vector.broadcast %27 : vector<16x1xf32> to vector<16x16xf32>
    %29 = arith.subf %25, %28 : vector<16x16xf32>
    %30 = math.exp %29 : vector<16x16xf32>
    %cst_20 = arith.constant dense<0.000000e+00> : vector<16xf32>
    %31 = vector.multi_reduction <add>, %30, %cst_20 [1] : vector<16x16xf32> to vector<16xf32>
    %32 = vector.shape_cast %31 : vector<16xf32> to vector<16x1xf32>
    %33 = tpu.reciprocal %32 {approx = true} : vector<16x1xf32> -> vector<16x1xf32>
    %34 = vector.broadcast %33 : vector<16x1xf32> to vector<16x16xf32>
    %35 = arith.mulf %30, %34 : vector<16x16xf32>
    %cst_21 = arith.constant dense<0.000000e+00> : vector<16x16xf32>
    %36 = tpu.matmul %35, %15, %cst_21 {dimension_numbers = #tpu.dot_dimension_numbers<[1], [0], [0], [1], [0, 0, 1, 1], [], []>} : vector<16x16xf32>, vector<16x16xf32>, vector<16x16xf32> -> vector<16x16xf32>
    %37 = vector.extract_strided_slice %10 {offsets = [0, 0], sizes = [1, 16], strides = [1, 1]} : vector<2x16xf32> to vector<1x16xf32>
    %38 = vector.broadcast %37 : vector<1x16xf32> to vector<16x16xf32>
    %39 = arith.addf %36, %38 : vector<16x16xf32>
    %cst_22 = arith.constant 0.000000e+00 : f32
    %40 = vector.broadcast %cst_22 : f32 to vector<16x16xf32>
    %41 = arith.maximumf %39, %40 : vector<16x16xf32>
    %42 = vector.extract_strided_slice %11 {offsets = [0, 0], sizes = [16, 128], strides = [1, 1]} : vector<32x128xf32> to vector<16x128xf32>
    %cst_23 = arith.constant dense<0.000000e+00> : vector<16x128xf32>
    %43 = tpu.matmul %41, %42, %cst_23 {dimension_numbers = #tpu.dot_dimension_numbers<[1], [0], [0], [1], [0, 0, 1, 1], [], []>} : vector<16x16xf32>, vector<16x128xf32>, vector<16x128xf32> -> vector<16x128xf32>
    %44 = arith.addf %12, %43 : vector<16x128xf32>
    %45 = vector.extract_strided_slice %9 {offsets = [0, 1], sizes = [16, 1], strides = [1, 1]} : vector<16x2xf32> to vector<16x1xf32>
    %46 = vector.extract_strided_slice %7 {offsets = [1, 0], sizes = [1, 16], strides = [1, 1]} : vector<2x16xf32> to vector<1x16xf32>
    %47 = vector.extract_strided_slice %5 {offsets = [0, 16], sizes = [16, 16], strides = [1, 1]} : vector<16x32xf32> to vector<16x16xf32>
    %48 = vector.broadcast %45 : vector<16x1xf32> to vector<16x16xf32>
    %49 = vector.broadcast %46 : vector<1x16xf32> to vector<16x16xf32>
    %50 = arith.addf %48, %49 : vector<16x16xf32>
    %cst_24 = arith.constant 0.000000e+00 : f32
    %51 = vector.broadcast %cst_24 : f32 to vector<16x16xf32>
    %52 = arith.cmpf ogt, %50, %51 : vector<16x16xf32>
    %cst_25 = arith.constant 2.000000e-01 : f32
    %53 = vector.broadcast %cst_25 : f32 to vector<16x16xf32>
    %54 = arith.mulf %53, %50 : vector<16x16xf32>
    %55 = arith.select %52, %50, %54 : vector<16x16xi1>, vector<16x16xf32>
    %cst_26 = arith.constant -1.000000e+30 : f32
    %56 = vector.broadcast %cst_26 : f32 to vector<16x16xf32>
    %57 = arith.select %2, %55, %56 : vector<16x16xi1>, vector<16x16xf32>
    %cst_27 = arith.constant dense<0xFF800000> : vector<16xf32>
    %58 = vector.multi_reduction <maximumf>, %57, %cst_27 [1] : vector<16x16xf32> to vector<16xf32>
    %59 = vector.shape_cast %58 : vector<16xf32> to vector<16x1xf32>
    %60 = vector.broadcast %59 : vector<16x1xf32> to vector<16x16xf32>
    %61 = arith.subf %57, %60 : vector<16x16xf32>
    %62 = math.exp %61 : vector<16x16xf32>
    %cst_28 = arith.constant dense<0.000000e+00> : vector<16xf32>
    %63 = vector.multi_reduction <add>, %62, %cst_28 [1] : vector<16x16xf32> to vector<16xf32>
    %64 = vector.shape_cast %63 : vector<16xf32> to vector<16x1xf32>
    %65 = tpu.reciprocal %64 {approx = true} : vector<16x1xf32> -> vector<16x1xf32>
    %66 = vector.broadcast %65 : vector<16x1xf32> to vector<16x16xf32>
    %67 = arith.mulf %62, %66 : vector<16x16xf32>
    %cst_29 = arith.constant dense<0.000000e+00> : vector<16x16xf32>
    %68 = tpu.matmul %67, %47, %cst_29 {dimension_numbers = #tpu.dot_dimension_numbers<[1], [0], [0], [1], [0, 0, 1, 1], [], []>} : vector<16x16xf32>, vector<16x16xf32>, vector<16x16xf32> -> vector<16x16xf32>
    %69 = vector.extract_strided_slice %10 {offsets = [1, 0], sizes = [1, 16], strides = [1, 1]} : vector<2x16xf32> to vector<1x16xf32>
    %70 = vector.broadcast %69 : vector<1x16xf32> to vector<16x16xf32>
    %71 = arith.addf %68, %70 : vector<16x16xf32>
    %cst_30 = arith.constant 0.000000e+00 : f32
    %72 = vector.broadcast %cst_30 : f32 to vector<16x16xf32>
    %73 = arith.maximumf %71, %72 : vector<16x16xf32>
    %74 = vector.extract_strided_slice %11 {offsets = [16, 0], sizes = [16, 128], strides = [1, 1]} : vector<32x128xf32> to vector<16x128xf32>
    %cst_31 = arith.constant dense<0.000000e+00> : vector<16x128xf32>
    %75 = tpu.matmul %73, %74, %cst_31 {dimension_numbers = #tpu.dot_dimension_numbers<[1], [0], [0], [1], [0, 0, 1, 1], [], []>} : vector<16x16xf32>, vector<16x128xf32>, vector<16x128xf32> -> vector<16x128xf32>
    %76 = arith.addf %44, %75 : vector<16x128xf32>
    %c0_32 = arith.constant 0 : index
    %c0_33 = arith.constant 0 : index
    %77 = vector.load %arg7[%c0_32, %c0_33] : memref<1x128xf32, #tpu.memory_space<vmem>>, vector<1x128xf32>
    %cst_34 = arith.constant dense<0.000000e+00> : vector<1x16xf32>
    %78 = tpu.matmul %77, %76, %cst_34 {dimension_numbers = #tpu.dot_dimension_numbers<[1], [1], [0], [0], [0, 0, 1, 0], [], []>} : vector<1x128xf32>, vector<16x128xf32>, vector<1x16xf32> -> vector<1x16xf32>
    %c0_35 = arith.constant 0 : index
    %c0_36 = arith.constant 0 : index
    %79 = vector.load %arg8[%c0_35, %c0_36] : memref<128x1xf32, #tpu.memory_space<vmem>>, vector<128x1xf32>
    %cst_37 = arith.constant dense<0.000000e+00> : vector<16x1xf32>
    %80 = tpu.matmul %76, %79, %cst_37 {dimension_numbers = #tpu.dot_dimension_numbers<[1], [0], [0], [1], [0, 0, 1, 1], [], []>} : vector<16x128xf32>, vector<128x1xf32>, vector<16x1xf32> -> vector<16x1xf32>
    %81 = vector.broadcast %80 : vector<16x1xf32> to vector<16x16xf32>
    %82 = vector.broadcast %78 : vector<1x16xf32> to vector<16x16xf32>
    %83 = arith.addf %81, %82 : vector<16x16xf32>
    %cst_38 = arith.constant 0.000000e+00 : f32
    %84 = vector.broadcast %cst_38 : f32 to vector<16x16xf32>
    %85 = arith.cmpf ogt, %83, %84 : vector<16x16xf32>
    %cst_39 = arith.constant 2.000000e-01 : f32
    %86 = vector.broadcast %cst_39 : f32 to vector<16x16xf32>
    %87 = arith.mulf %86, %83 : vector<16x16xf32>
    %88 = arith.select %85, %83, %87 : vector<16x16xi1>, vector<16x16xf32>
    %cst_40 = arith.constant -1.000000e+30 : f32
    %89 = vector.broadcast %cst_40 : f32 to vector<16x16xf32>
    %90 = arith.select %2, %88, %89 : vector<16x16xi1>, vector<16x16xf32>
    %cst_41 = arith.constant dense<0xFF800000> : vector<16xf32>
    %91 = vector.multi_reduction <maximumf>, %90, %cst_41 [1] : vector<16x16xf32> to vector<16xf32>
    %92 = vector.shape_cast %91 : vector<16xf32> to vector<16x1xf32>
    %93 = vector.broadcast %92 : vector<16x1xf32> to vector<16x16xf32>
    %94 = arith.subf %90, %93 : vector<16x16xf32>
    %95 = math.exp %94 : vector<16x16xf32>
    %cst_42 = arith.constant dense<0.000000e+00> : vector<16xf32>
    %96 = vector.multi_reduction <add>, %95, %cst_42 [1] : vector<16x16xf32> to vector<16xf32>
    %97 = vector.shape_cast %96 : vector<16xf32> to vector<16x1xf32>
    %98 = tpu.reciprocal %97 {approx = true} : vector<16x1xf32> -> vector<16x1xf32>
    %99 = vector.broadcast %98 : vector<16x1xf32> to vector<16x16xf32>
    %100 = arith.mulf %95, %99 : vector<16x16xf32>
    %cst_43 = arith.constant dense<0.000000e+00> : vector<16x128xf32>
    %101 = tpu.matmul %100, %76, %cst_43 {dimension_numbers = #tpu.dot_dimension_numbers<[1], [0], [0], [1], [0, 0, 1, 1], [], []>} : vector<16x16xf32>, vector<16x128xf32>, vector<16x128xf32> -> vector<16x128xf32>
    %c0_44 = arith.constant 0 : index
    %c0_45 = arith.constant 0 : index
    %102 = vector.load %arg9[%c0_44, %c0_45] : memref<1x128xf32, #tpu.memory_space<vmem>>, vector<1x128xf32>
    %103 = vector.broadcast %102 : vector<1x128xf32> to vector<16x128xf32>
    %104 = arith.addf %101, %103 : vector<16x128xf32>
    %c0_46 = arith.constant 0 : index
    %c0_47 = arith.constant 0 : index
    %105 = vector.load %arg10[%c0_46, %c0_47] : memref<16x128xf32, #tpu.memory_space<vmem>>, vector<16x128xf32>
    tpu.vector_store %arg10[%c0_46, %c0_47], %104 {strides = array<i32>} : memref<16x128xf32, #tpu.memory_space<vmem>>, vector<16x128xf32>,
    return
  }
}

</mosaic_0001>

<bundles_post_ra>
// kernel: tpu_custom_call.1
= control target key start
LH: loop header
LB: loop body
LE: loop exit
PB: predicated region body
PF: predicated region fallthrough
CT: control target
= control target key end

     0   :  { %vm45_vm0 = vcmask 64512   ;;  %s813_s0 = inlined_call_operand.vmem [shape: f32[16,8], index: 0, kind: input, shape index: {}]   ;;  %s814_s1 = inlined_call_operand.vmem [shape: s8[16,16], index: 1, kind: input, shape index: {}]   ;;  %s815_s2 = inlined_call_operand.vmem [shape: f32[8,32], index: 2, kind: input, shape index: {}]   ;;  %s816_s3 = inlined_call_operand.vmem [shape: f32[2,32], index: 3, kind: input, shape index: {}]   ;;  %s817_s4 = inlined_call_operand.vmem [shape: f32[32,2], index: 4, kind: input, shape index: {}]   ;;  %s818_s5 = inlined_call_operand.vmem [shape: f32[2,16], index: 5, kind: input, shape index: {}]   ;;  %s819_s6 = inlined_call_operand.vmem [shape: f32[32,128], index: 6, kind: input, shape index: {}]   ;;  %s820_s7 = inlined_call_operand.vmem [shape: f32[1,128], index: 7, kind: input, shape index: {}]   ;;  %s821_s8 = inlined_call_operand.vmem [shape: f32[128,1], index: 8, kind: input, shape index: {}]   ;;  %s822_s9 = inlined_call_operand.vmem [shape: f32[1,128], index: 9, kind: input, shape index: {}]   ;;  %s823_s10 = inlined_call_operand.hbm [shape: f32[16,128], index: 10, kind: output, shape index: {}]  }
   0x1   :  { %v44_v0 = vld [vmem:[%s815_s2] sm:$0xff]  ;;  %v109_v2 = vld [vmem:[%s817_s4 + $0x18] sm:$0xff]  ;;  %v108_v3 = vld [vmem:[%s817_s4 + $0x10] sm:$0xff] }
   0x2   :  { %v42_v1 = vld [vmem:[%s813_s0] sm:$0xff]  ;;  %67 = vmatpush.msra.mxu0 %v44_v0  ;;  %122 = vmatpush.msra.mxu2 %v109_v2 }
   0x3   :  { %513 = vmatmul.msk.f32.vlgmr.msra.gmra.mxu0 %vm45_vm0, %v42_v1 }
   0x4   :  { %15 = vsyncpa [#allocation3], 0  ;;  %v107_v4 = vld [vmem:[%s817_s4 + $0x8] sm:$0xff]  ;;  %123 = vmatpush.msra.mxu2 %v108_v3  ;;  %v106_v6 = vld [vmem:[%s817_s4] sm:$0xff]  ;;  %v596_v7 = vmov 1   ;;  %v597_v8 = vmov 0  }
   0x5   :  { %v43_v5 = vld [vmem:[%s813_s0 + $0x8] sm:$0xff]  ;;  %537 = vset.pattern.permute.xlu1 %v596_v7  ;;  %536 = vset.pattern.permute.xlu0 %v597_v8  ;;  %vm76_vm1 = vcmask 261120   ;;  %v75_v11 = vld [vmem:[%s816_s3] sm:$0x3]  ;;  %v39_v17 = vld [vmem:[%s814_s1 + $0x2] sm:$0x3] }
   0x6   :  { %124 = vmatpush.msra.mxu2 %v107_v4  ;;  %544 = vset.pattern.permute.xlu2 %v597_v8  ;;  %v38_v14 = vld [vmem:[%s814_s1] sm:$0x3]  ;;  %vm41_vm3 = vnez %v39_v17  ;;  %vm165_vm7 = vcmask 130048   ;;  %s598_s1 = smov 112   ;;  %v135_v7 = vld [vmem:[%s819_s6 + $0x8] sm:$0xff]  ;;  %s599_s24 = smov [#allocation2]  }
   0x7   :  { %vm40_vm2 = vnez %v38_v14  ;;  %v158_v26 = vsel %vm41_vm3, 16843009, %v597_v8  ;;  %s501_s4 = sshll.u32 %s823_s10, 4  ;;  %s600_s26 = smov 128   ;;  %s502_s4 = int_to_ptr.hbm [resolvable:$true] %s501_s4 }
   0x8   :  { %125 = vmatpush.msra.mxu2 %v106_v6  ;;  %v157_v16 = vsel %vm40_vm2, 16843009, %v597_v8  ;;  %v160_v33 = vunpack.c.0.s8 %v158_v26  ;;  %v133_v26 = vld [vmem:[%s818_s5] sm:$0x3]  ;;  %s499_s5 = sshll.u32 %s599_s24, 4  ;;  %s601_s27 = smov 8   ;;  %s500_s5 = int_to_ptr.vmem [resolvable:$true] %s499_s5 }
   0x9   :  { %v159_v20 = vunpack.c.0.s8 %v157_v16 }
   0xa   :  { %vm707_vm8 = vcmp.ne.s32.totalorder %v160_v33, 0 }
   0xb   :  { %514 = vmatmul.msk.f32.gmra.mxu0 %vm45_vm0, %v43_v5  ;;  %vm697_vm4 = vcmp.ne.s32.totalorder %v159_v20, 0 }
  0x80   :  { %v678_v9 = vpop.f32.mrf.mxu0 }
  0x81   :  { %518 = vmatmul.msk.f32.vlgmr.msra.gmra.mxu2 %vm76_vm1, %v678_v9 }
  0x88   :  { %v681_v10 = vpop.f32.mrf.mxu0 }
  0x89   :  { %515 = vmatpush.xpose.msk.msrb.mxu0 %vm76_vm1, %v681_v10  ;;  %519 = vmatmul.msk.f32.gmra.mxu2 %vm76_vm1, %v681_v10  ;;  %v538_v5 = vpack.i.bf16 %v678_v9, %v681_v10 }
  0x8a   :  { %209 = vmatpush.msra.mxu3 %v681_v10 }
  0x8c   :  { %210 = vmatpush.msra.mxu3 %v678_v9 }
  0x8d   :  { %516 = vmatpush.xpose.msk.msrb.mxu0 %vm76_vm1, %v678_v9 }
  0x8e   :  { %348 = vmatpush.msrb.mxu3 %v135_v7 }
  0x90   :  { %517 = vmatmul.msk.f32.vlgmr.msrb.gmra.mxu0 %vm76_vm1, %v75_v11 }
 0x104   :  { %v127_v12 = vpop.f32.mrf.mxu2 }
 0x105   :  { %221 = vperm.xlu1 %537, %v127_v12   ;;  %140 = vperm.xlu0 %536, %v127_v12  }
 0x10c   :  { %v130_v13 = vpop.f32.mrf.mxu2 }
 0x10d   :  { %225 = vperm.xlu1 %537, %v130_v13   ;;  %145 = vperm.xlu0 %536, %v130_v13   ;;  %v103_v15 = vpop.f32.mrf.mxu0 }
 0x10e   :  { %v148_v18 = vperm.slane %v103_v15, 0  ;;  %v228_v19 = vperm.slane %v103_v15, 1 }
 0x115   :  { %543 = vset.pattern.permute.xlu1 %v597_v8 }
 0x177   :  { %v222_v21 = vpop.permute.xlu1 %221  ;;  %v141_v22 = vpop.permute.xlu0 %140 }
 0x178   :  { %v229_v23 = vadd.f32 %v228_v19, %v222_v21  ;;  %v149_v24 = vadd.f32 %v148_v18, %v141_v22  ;;  %v134_v22 = vld [vmem:[%s819_s6] sm:$0xff] }
 0x179   :  { %349 = vmatpush.msrb.mxu3 %v134_v22 }
 0x17a   :  { %v233_v27 = vmul.f32 0.2, %v229_v23  ;;  %v153_v28 = vmul.f32 0.2, %v149_v24  ;;  %vm231_vm5 = vcmp.gt.f32.partialorder %v229_v23, 0.0  ;;  %vm151_vm6 = vcmp.gt.f32.partialorder %v149_v24, 0.0 }
 0x17c   :  { %v235_v29 = vsel %vm231_vm5, %v229_v23, %v233_v27  ;;  %v155_v30 = vsel %vm151_vm6, %v149_v24, %v153_v28  ;;  %v137_v23 = vld [vmem:[%s819_s6 + $0x18] sm:$0xff]  ;;  %v136_v24 = vld [vmem:[%s819_s6 + $0x10] sm:$0xff] }
 0x17d   :  { %v237_v31 = vsel %vm697_vm4, %v235_v29, -1e+30  ;;  %v163_v32 = vsel %vm697_vm4, %v155_v30, -1e+30  ;;  %319 = vmatpush.msra.mxu0 %v137_v23  ;;  %v393_v27 = vld [vmem:[%s821_s8 + $0x78] sm:$0xff]  ;;  %v392_v28 = vld [vmem:[%s821_s8 + $0x70] sm:$0xff] }
 0x17e   :  { %v239_v34 = vsel %vm165_vm7, %v237_v31, -inf  ;;  %v166_v35 = vsel %vm165_vm7, %v163_v32, -inf  ;;  %v188_v29 = vperm.slane %v133_v26, 0  ;;  %v391_v30 = vld [vmem:[%s821_s8 + $0x68] sm:$0xff] }
 0x17f   :  { %v226_v36 = vpop.permute.xlu1 %225  ;;  %v146_v37 = vpop.permute.xlu0 %145  ;;  %240 = vmax.xlane.f32.xlu0 %v239_v34  ;;  %167 = vmax.xlane.f32.xlu2 %v166_v35  ;;  %v389_v34 = vld [vmem:[%s821_s8 + $0x58] sm:$0xff] }
 0x180   :  { %v230_v38 = vadd.f32 %v228_v19, %v226_v36  ;;  %v150_v39 = vadd.f32 %v148_v18, %v146_v37  ;;  %320 = vmatpush.msra.mxu0 %v136_v24  ;;  %v388_v36 = vld [vmem:[%s821_s8 + $0x50] sm:$0xff]  ;;  %v387_v37 = vld [vmem:[%s821_s8 + $0x48] sm:$0xff] }
 0x182   :  { %v234_v41 = vmul.f32 0.2, %v230_v38  ;;  %v154_v42 = vmul.f32 0.2, %v150_v39  ;;  %vm232_vm9 = vcmp.gt.f32.partialorder %v230_v38, 0.0  ;;  %vm152_vm10 = vcmp.gt.f32.partialorder %v150_v39, 0.0 }
 0x184   :  { %v236_v43 = vsel %vm232_vm9, %v230_v38, %v234_v41  ;;  %v156_v44 = vsel %vm152_vm10, %v150_v39, %v154_v42  ;;  %v386_v38 = vld [vmem:[%s821_s8 + $0x40] sm:$0xff]  ;;  %v385_v39 = vld [vmem:[%s821_s8 + $0x38] sm:$0xff]  ;;  %v261_v41 = vperm.slane %v133_v26, 1  ;;  %v384_v42 = vld [vmem:[%s821_s8 + $0x30] sm:$0xff] }
 0x185   :  { %v238_v45 = vsel %vm707_vm8, %v236_v43, -1e+30  ;;  %v164_v46 = vsel %vm707_vm8, %v156_v44, -1e+30 }
 0x186   :  { %v242_v47 = vsel %vm165_vm7, %v238_v45, -inf  ;;  %v169_v48 = vsel %vm165_vm7, %v164_v46, -inf }
 0x187   :  { %243 = vmax.xlane.f32.xlu1 %v242_v47  ;;  %170 = vmax.xlane.f32.xlu2 %v169_v48 }
 0x1f2   :  { %v168_v49 = vpop.xlane.xlu2 %167  ;;  %v241_v50 = vpop.xlane.xlu0 %240 }
 0x1f3   :  { %v172_v51 = vsub.f32 %v163_v32, %v168_v49  ;;  %v245_v53 = vsub.f32 %v237_v31, %v241_v50  ;;  %v390_v31 = vld [vmem:[%s821_s8 + $0x60] sm:$0xff] }
 0x1f5   :  { %v174_v52 = vmul.f32 1.442695, %v172_v51  ;;  %v247_v54 = vmul.f32 1.442695, %v245_v53  ;;  %v382_v53 = vld [vmem:[%s821_s8 + $0x20] sm:$0xff] }
 0x1f7   :  { %546 = vpow2.f32 %v174_v52  ;;  %v383_v52 = vld [vmem:[%s821_s8 + $0x28] sm:$0xff] }
 0x1f8   :  { %548 = vpow2.f32 %v247_v54  ;;  %v381_v54 = vld [vmem:[%s821_s8 + $0x18] sm:$0xff] }
 0x1fa   :  { %v244_v55 = vpop.xlane.xlu1 %243  ;;  %v171_v57 = vpop.xlane.xlu2 %170 }
 0x1fb   :  { %v246_v56 = vsub.f32 %v238_v45, %v244_v55  ;;  %v173_v60 = vsub.f32 %v164_v46, %v171_v57  ;;  %v380_v55 = vld [vmem:[%s821_s8 + $0x10] sm:$0xff]  ;;  %v378_v57 = vld [vmem:[%s821_s8] sm:$0xff] }
 0x1fd   :  { %v249_v58 = vmul.f32 1.442695, %v246_v56  ;;  %v547_v59 = vpop.eup %546  ;;  %v176_v62 = vmul.f32 1.442695, %v173_v60  ;;  %v379_v56 = vld [vmem:[%s821_s8 + $0x8] sm:$0xff] }
 0x1fe   :  { %v178_v61 = vsel %vm165_vm7, %v547_v59, 0.0  ;;  %v549_v63 = vpop.eup %548 }
 0x1ff   :  { %550 = vpow2.f32 %v249_v58  ;;  %179 = vadd.xlane.f32.xlu2 %v178_v61  ;;  %v251_v2 = vsel %vm165_vm7, %v549_v63, 0.0 }
 0x200   :  { %552 = vpow2.f32 %v176_v62 }
 0x205   :  { %v551_v0 = vpop.eup %550 }
 0x206   :  { %v254_v1 = vsel %vm165_vm7, %v551_v0, 0.0  ;;  %v553_v3 = vpop.eup %552 }
 0x207   :  { %255 = vadd.xlane.f32.xlu0 %v254_v1  ;;  %252 = vadd.xlane.f32.xlu2 %v251_v2  ;;  %v181_v4 = vsel %vm165_vm7, %v553_v3, 0.0 }
 0x20f   :  { %182 = vadd.xlane.f32.xlu2 %v181_v4 }
 0x227   :  { %539 = vrot.lane.b32.xlu2 %v538_v5, %s598_s1 }
 0x272   :  { %v180_v6 = vpop.xlane.xlu2 %179 }
 0x273   :  { %554 = vrcp.f32 %v180_v6 }
 0x279   :  { %v555_v8 = vpop.eup %554 }
 0x27a   :  { %v253_v11 = vpop.xlane.xlu2 %252  ;;  %v186_v12 = vmul.f32 %v555_v8, %v547_v59  ;;  %v256_v15 = vpop.xlane.xlu0 %255 }
 0x27c   :  { %520 = vmatmul.msk.f32.vlgmr.msra.gmra.mxu3 %vm165_vm7, %v186_v12 }
 0x282   :  { %v183_v13 = vpop.xlane.xlu2 %182 }
 0x283   :  { %556 = vrcp.f32 %v183_v13 }
 0x284   :  { %558 = vrcp.f32 %v253_v11 }
 0x285   :  { %560 = vrcp.f32 %v256_v15 }
 0x289   :  { %v557_v14 = vpop.eup %556 }
 0x28a   :  { %v540_v9 = vpop.permute.xlu2 %539  ;;  %v187_v10 = vmul.f32 %v557_v14, %v553_v3  ;;  %v559_v16 = vpop.eup %558 }
 0x28b   :  { %v541_v17 = vunpack.i.l.bf16 %v540_v9  ;;  %v542_v18 = vunpack.i.h.bf16 %v540_v9  ;;  %v259_v19 = vmul.f32 %v559_v16, %v549_v63  ;;  %v561_v20 = vpop.eup %560 }
 0x28c   :  { %521 = vmatmul.msk.f32.gmra.mxu3 %vm165_vm7, %v187_v10  ;;  %v260_v21 = vmul.f32 %v561_v20, %v551_v0  ;;  %v357_v0 = vld [vmem:[%s820_s7] sm:$0x1] }
 0x28d   :  { %288 = vmatpush.msra.mxu1 %v541_v17 }
 0x28f   :  { %289 = vmatpush.msra.mxu1 %v542_v18 }
 0x290   :  { %522 = vmatmul.msk.f32.vlgmr.msra.gmra.mxu1 %vm165_vm7, %v259_v19 }
 0x291   :  { %394 = vmatpush.msrb.mxu1 %v393_v27 }
 0x293   :  { %395 = vmatpush.msrb.mxu1 %v392_v28 }
 0x295   :  { %396 = vmatpush.msrb.mxu1 %v391_v30 }
 0x297   :  { %397 = vmatpush.msrb.mxu1 %v390_v31 }
 0x298   :  { %523 = vmatmul.msk.f32.gmra.mxu1 %vm165_vm7, %v260_v21 }
 0x299   :  { %398 = vmatpush.msrb.mxu1 %v389_v34 }
 0x29b   :  { %399 = vmatpush.msrb.mxu1 %v388_v36 }
 0x29d   :  { %400 = vmatpush.msrb.mxu1 %v387_v37 }
 0x29f   :  { %401 = vmatpush.msrb.mxu1 %v386_v38 }
 0x2a1   :  { %402 = vmatpush.msrb.mxu1 %v385_v39 }
 0x2a3   :  { %403 = vmatpush.msrb.mxu1 %v384_v42 }
 0x2a5   :  { %404 = vmatpush.msrb.mxu1 %v383_v52 }
 0x2a7   :  { %405 = vmatpush.msrb.mxu1 %v382_v53 }
 0x2a9   :  { %406 = vmatpush.msrb.mxu1 %v381_v54 }
 0x2ab   :  { %407 = vmatpush.msrb.mxu1 %v380_v55 }
 0x2ad   :  { %408 = vmatpush.msrb.mxu1 %v379_v56 }
 0x2af   :  { %409 = vmatpush.msrb.mxu1 %v378_v57 }
 0x2ff   :  { %v212_v32 = vpop.f32.mrf.mxu3 }
 0x300   :  { %v213_v33 = vadd.f32 %v212_v32, %v188_v29  ;;  %v545_v32 = vld [vmem:[%s822_s9] ss:$0 sm:$0xff] }
 0x302   :  { %v218_v35 = vmax.f32 %v213_v33, 0.0 }
 0x304   :  { %526 = vmatmul.msk.f32.vlgmr.msrb.gmra.mxu3 %vm165_vm7, %v218_v35 }
 0x30d   :  { %v291_v43 = vpop.f32.mrf.mxu1 }
 0x30e   :  { %v292_v44 = vadd.f32 %v291_v43, %v261_v41 }
 0x30f   :  { %v215_v45 = vpop.f32.mrf.mxu3 }
 0x310   :  { %v297_v46 = vmax.f32 %v292_v44, 0.0  ;;  %v216_v47 = vadd.f32 %v215_v45, %v188_v29 }
 0x312   :  { %v219_v48 = vmax.f32 %v216_v47, 0.0  ;;  %524 = vmatmul.msk.f32.vlgmr.msra.gmra.mxu0 %vm165_vm7, %v297_v46 }
 0x314   :  { %527 = vmatmul.msk.f32.gmra.mxu3 %vm165_vm7, %v219_v48 }
 0x315   :  { %v294_v49 = vpop.f32.mrf.mxu1 }
 0x316   :  { %v295_v50 = vadd.f32 %v294_v49, %v261_v41 }
 0x318   :  { %v298_v51 = vmax.f32 %v295_v50, 0.0 }
 0x31a   :  { %525 = vmatmul.msk.f32.gmra.mxu0 %vm165_vm7, %v298_v51 }
 0x387   :  { %v351_v58 = vpop.f32.mrf.mxu3 }
 0x38f   :  { %v322_v59 = vpop.f32.mrf.mxu0 }
 0x390   :  { %v352_v60 = vadd.f32 %v351_v58, %v322_v59 }
 0x392   :  { %410 = vmatmul.f32.vlgmr.msrb.gmra.mxu1 %v352_v60 }
 0x397   :  { %v325_v61 = vpop.f32.mrf.mxu0  ;;  %v354_v62 = vpop.f32.mrf.mxu3 }
 0x398   :  { %v355_v63 = vadd.f32 %v354_v62, %v325_v61 }
 0x39a   :  { %372 = vmatpush.xpose.msrb.mxu2 %v355_v63  ;;  %413 = vmatmul.f32.gmra.mxu1 %v355_v63 }
 0x39e   :  { %373 = vmatpush.xpose.msrb.mxu2 %v352_v60 }
 0x3a1   :  { %374 = vmatmul.f32.vlgmr.msrb.gmra.mxu2 %v357_v0 }
 0x3a2   :  { %484 = vmatpush.msra.mxu2 %v355_v63 }
 0x3a4   :  { %485 = vmatpush.msra.mxu2 %v352_v60 }
 0x40f   :  { %v411_v1 = vpop.f32.mrf.mxu1 }
 0x410   :  { %419 = vperm.xlu1 %543, %v411_v1  }
 0x417   :  { %v414_v2 = vpop.f32.mrf.mxu1 }
 0x418   :  { %424 = vperm.xlu2 %544, %v414_v2  }
 0x424   :  { %v375_v3 = vpop.f32.mrf.mxu2 }
 0x425   :  { %v427_v4 = vperm.slane %v375_v3, 0 }
 0x472   :  { %v425_v5 = vpop.permute.xlu2 %424 }
 0x473   :  { %v429_v6 = vadd.f32 %v427_v4, %v425_v5 }
 0x475   :  { %v433_v7 = vmul.f32 0.2, %v429_v6  ;;  %vm431_vm11 = vcmp.gt.f32.partialorder %v429_v6, 0.0 }
 0x477   :  { %v435_v8 = vsel %vm431_vm11, %v429_v6, %v433_v7 }
 0x478   :  { %v437_v11 = vsel %vm707_vm8, %v435_v8, -1e+30 }
 0x479   :  { %v441_v12 = vsel %vm165_vm7, %v437_v11, -inf }
 0x47a   :  { %442 = vmax.xlane.f32.xlu2 %v441_v12 }
 0x482   :  { %v420_v13 = vpop.permute.xlu1 %419 }
 0x483   :  { %v428_v14 = vadd.f32 %v427_v4, %v420_v13 }
 0x485   :  { %v432_v15 = vmul.f32 0.2, %v428_v14  ;;  %vm430_vm12 = vcmp.gt.f32.partialorder %v428_v14, 0.0 }
 0x487   :  { %v434_v9 = vsel %vm430_vm12, %v428_v14, %v432_v15 }
 0x488   :  { %v436_v10 = vsel %vm697_vm4, %v434_v9, -1e+30 }
 0x489   :  { %v438_v16 = vsel %vm165_vm7, %v436_v10, -inf }
 0x48a   :  { %439 = vmax.xlane.f32.xlu0 %v438_v16 }
 0x4ed   :  { %v443_v17 = vpop.xlane.xlu2 %442 }
 0x4ee   :  { %v445_v20 = vsub.f32 %v437_v11, %v443_v17 }
 0x4f0   :  { %v448_v21 = vmul.f32 1.442695, %v445_v20 }
 0x4fd   :  { %v440_v18 = vpop.xlane.xlu0 %439 }
 0x4fe   :  { %v444_v19 = vsub.f32 %v436_v10, %v440_v18 }
 0x500   :  { %v446_v40 = vmul.f32 1.442695, %v444_v19 }
 0x502   :  { %562 = vpow2.f32 %v446_v40 }
 0x503   :  { %564 = vpow2.f32 %v448_v21 }
 0x508   :  { %v563_v22 = vpop.eup %562 }
 0x509   :  { %v450_v23 = vsel %vm165_vm7, %v563_v22, 0.0  ;;  %v565_v24 = vpop.eup %564 }
 0x50a   :  { %451 = vadd.xlane.f32.xlu0 %v450_v23  ;;  %v453_v26 = vsel %vm165_vm7, %v565_v24, 0.0 }
 0x512   :  { %454 = vadd.xlane.f32.xlu0 %v453_v26 }
 0x57d   :  { %v452_v25 = vpop.xlane.xlu0 %451 }
 0x57e   :  { %566 = vrcp.f32 %v452_v25 }
 0x584   :  { %v567_v27 = vpop.eup %566 }
 0x585   :  { %v458_v28 = vmul.f32 %v567_v27, %v563_v22  ;;  %v455_v29 = vpop.xlane.xlu0 %454 }
 0x586   :  { %568 = vrcp.f32 %v455_v29 }
 0x587   :  { %528 = vmatmul.msk.f32.vlgmr.msra.gmra.mxu2 %vm165_vm7, %v458_v28 }
 0x58c   :  { %v569_v30 = vpop.eup %568 }
 0x58d   :  { %v459_v31 = vmul.f32 %v569_v30, %v565_v24 }
 0x58f   :  { %529 = vmatmul.msk.f32.gmra.mxu2 %vm165_vm7, %v459_v31 }
 0x60a   :  { %v487_v33 = vpop.f32.mrf.mxu2 }
 0x60b   :  { %v488_v34 = vadd.f32 %v545_v32, %v487_v33 }
 0x60d   :  { %493 = vst [vmem:[#allocation2] sm:$0xff] %v488_v34 }
 0x612   :  { %v490_v35 = vpop.f32.mrf.mxu2 }
 0x613   :  { %v491_v36 = vadd.f32 %v545_v32, %v490_v35 }
 0x615   :  { %494 = vst [vmem:[#allocation2 + $0x8] sm:$0xff] %v491_v36 }
 0x616   :  { %507 = dma.vmem_to_hbm [thread:$0]  %s500_s5, 256, %s502_s4, [#allocation3], %s600_s26, %s600_s26, %s601_s27  }
 0x617   :  { %594 = dma.done.wait [#allocation3], 256  }
 0x618   :  { %595 = vsyncadd [#allocation3], 4294967040 }
 0x619   :  { %512 = vsyncpa [#allocation3], 1 }

</bundles_post_ra>
